<compile_context>
chip_gen: v5e
topology: v5e:2x2
jax: 0.10.0
libtpu: 0.0.40
codegen_flags: <defaults>
</compile_context>

<pallas_src>
import functools

import jax
import jax.numpy as jnp
from jax.experimental import pallas as pl
from jax.experimental.pallas import tpu as pltpu

LANE = 128
SUBLANE = 8


def _round_up(n, m):
    return ((n + m - 1) // m) * m


def dqn_kernel(x_ref, w1_ref, b1_ref, w2_ref, b2_ref, out_ref):
    # First linear + ReLU (matmul on MXU, bias add / relu on VPU — hidden under
    # the MXU / store slots).
    h = jnp.dot(x_ref[...], w1_ref[...], preferred_element_type=jnp.float32)
    h = jnp.maximum(h + b1_ref[...], 0.0)          # (tm, Hp) + (1, Hp)
    # Second linear; output tile is lane-dense (Ap is a multiple of 128).
    y = jnp.dot(h, w2_ref[...], preferred_element_type=jnp.float32)
    out_ref[...] = (y + b2_ref[...]).astype(out_ref.dtype)


def prepare_params(w1, b1, w2, b2):
    """One-time parameter prep (call at load time, NOT per forward).

    w1: (H, S), b1: (H,), w2: (A, H), b2: (A,)  -- PyTorch nn.Linear layout.
    Returns (in, out)-layout weights zero-padded so H and A are multiples of
    128 (lane-dense), plus the true action_size for un-padding the output.
    """
    H, S = w1.shape
    A = w2.shape[0]
    Hp = _round_up(H, LANE)
    Ap = _round_up(A, LANE)

    w1_t = jnp.zeros((S, Hp), jnp.float32).at[:, :H].set(jnp.transpose(w1))
    b1_r = jnp.zeros((1, Hp), jnp.float32).at[:, :H].set(b1.astype(jnp.float32))
    w2_t = jnp.zeros((Hp, Ap), jnp.float32).at[:H, :A].set(jnp.transpose(w2))
    b2_r = jnp.zeros((1, Ap), jnp.float32).at[:, :A].set(b2.astype(jnp.float32))
    return {"w1": w1_t, "b1": b1_r, "w2": w2_t, "b2": b2_r, "action_size": A}


@functools.partial(jax.jit, static_argnames=("action_size", "block_b"))
def _dqn_forward_impl(x, w1, b1, w2, b2, *, action_size, block_b):
    B, S = x.shape
    Hp = w1.shape[1]
    Ap = w2.shape[1]

    # Batch tile: multiple of 8 sublanes, capped at block_b for VMEM headroom
    # (tile sizing is conservative enough for v7x's 64 MiB VMEM too).
    tm = min(block_b, _round_up(B, SUBLANE))
    Bp = _round_up(B, tm)
    if Bp != B:
        x = jnp.zeros((Bp, S), x.dtype).at[:B].set(x)

    out = pl.pallas_call(
        dqn_kernel,
        out_shape=jax.ShapeDtypeStruct((Bp, Ap), jnp.float32),
        grid_spec=pltpu.PrefetchScalarGridSpec(
            num_scalar_prefetch=0,
            grid=(Bp // tm,),
            in_specs=[
                pl.BlockSpec((tm, S), lambda i: (i, 0)),     # x streams over batch
                pl.BlockSpec((S, Hp), lambda i: (0, 0)),     # weights stay VMEM-resident
                pl.BlockSpec((1, Hp), lambda i: (0, 0)),
                pl.BlockSpec((Hp, Ap), lambda i: (0, 0)),
                pl.BlockSpec((1, Ap), lambda i: (0, 0)),
            ],
            out_specs=pl.BlockSpec((tm, Ap), lambda i: (i, 0)),
        ),
        compiler_params=pltpu.CompilerParams(
            dimension_semantics=("parallel",),               # v7x: split batch over 2 TCs
        ),
    )(x, w1, b1, w2, b2)

    # Un-pad: true batch rows, true action columns (fused into the jit).
    return out[:B, :action_size]


def dqn_forward(x, params, *, block_b=512):
    """x: (B, state_size) float32; params from prepare_params()."""
    return _dqn_forward_impl(
        x, params["w1"], params["b1"], params["w2"], params["b2"],
        action_size=params["action_size"], block_b=block_b,
    )


def dqn_reference(x, w1, b1, w2, b2):
    h = jnp.maximum(x @ w1.T + b1, 0.0)
    return h @ w2.T + b2


if __name__ == "__main__":
    # Snake DQN-style sizes: state=16, hidden=32, actions=4, batch=8.
    batch, state_size, hidden_size, action_size = 8, 16, 32, 4

    key = jax.random.PRNGKey(0)
    kx, kw1, kb1, kw2, kb2 = jax.random.split(key, 5)

    # Deterministic parameter init (uniform, PyTorch nn.Linear shapes).
    bound1 = 1.0 / (state_size ** 0.5)
    bound2 = 1.0 / (hidden_size ** 0.5)
    w1 = jax.random.uniform(kw1, (hidden_size, state_size), jnp.float32, -bound1, bound1)
    b1 = jax.random.uniform(kb1, (hidden_size,), jnp.float32, -bound1, bound1)
    w2 = jax.random.uniform(kw2, (action_size, hidden_size), jnp.float32, -bound2, bound2)
    b2 = jax.random.uniform(kb2, (action_size,), jnp.float32, -bound2, bound2)

    x = jax.random.normal(kx, (batch, state_size), jnp.float32)

    # One-time layout prep (hoisted out of the hot path).
    params = prepare_params(w1, b1, w2, b2)

    out = dqn_forward(x, params)
    out = jax.block_until_ready(out)

    ref = dqn_reference(x, w1, b1, w2, b2)
    assert out.shape == (batch, action_size)
    assert jnp.allclose(out, ref, atol=1e-5, rtol=1e-5), "mismatch vs reference"

    print("KERNEL_OK")
</pallas_src>

<mosaic_0001>
module attributes {stable_mosaic.version = 11 : i64} {
  func.func @dqn_kernel(%arg0: i32, %arg1: memref<8x16xf32, #tpu.memory_space<vmem>>, %arg2: memref<16x128xf32, #tpu.memory_space<vmem>>, %arg3: memref<1x128xf32, #tpu.memory_space<vmem>>, %arg4: memref<128x128xf32, #tpu.memory_space<vmem>>, %arg5: memref<1x128xf32, #tpu.memory_space<vmem>>, %arg6: memref<8x128xf32, #tpu.memory_space<vmem>>) attributes {dimension_semantics = [#tpu.dimension_semantics<parallel>], iteration_bounds = array<i64: 1>, scalar_prefetch = 0 : i64, scratch_operands = 0 : i64, tpu.core_type = #tpu.core_type<tc>, window_params = [{transform_indices = @transform_0, window_bounds = array<i64: 8, 16>}, {pipeline_mode = #tpu.pipeline_mode<synchronous>, transform_indices = @transform_1, window_bounds = array<i64: 16, 128>}, {pipeline_mode = #tpu.pipeline_mode<synchronous>, transform_indices = @transform_2, window_bounds = array<i64: 1, 128>}, {pipeline_mode = #tpu.pipeline_mode<synchronous>, transform_indices = @transform_3, window_bounds = array<i64: 128, 128>}, {pipeline_mode = #tpu.pipeline_mode<synchronous>, transform_indices = @transform_4, window_bounds = array<i64: 1, 128>}, {transform_indices = @transform_5, window_bounds = array<i64: 8, 128>}]} {
    %c0 = arith.constant 0 : index
    %c0_0 = arith.constant 0 : index
    %0 = vector.load %arg1[%c0, %c0_0] : memref<8x16xf32, #tpu.memory_space<vmem>>, vector<8x16xf32>
    %c0_1 = arith.constant 0 : index
    %c0_2 = arith.constant 0 : index
    %1 = vector.load %arg2[%c0_1, %c0_2] : memref<16x128xf32, #tpu.memory_space<vmem>>, vector<16x128xf32>
    %cst = arith.constant dense<0.000000e+00> : vector<8x128xf32>
    %2 = tpu.matmul %0, %1, %cst {dimension_numbers = #tpu.dot_dimension_numbers<[1], [0], [0], [1], [0, 0, 1, 1], [], []>} : vector<8x16xf32>, vector<16x128xf32>, vector<8x128xf32> -> vector<8x128xf32>
    %c0_3 = arith.constant 0 : index
    %c0_4 = arith.constant 0 : index
    %3 = vector.load %arg3[%c0_3, %c0_4] : memref<1x128xf32, #tpu.memory_space<vmem>>, vector<1x128xf32>
    %4 = vector.broadcast %3 : vector<1x128xf32> to vector<8x128xf32>
    %5 = arith.addf %2, %4 : vector<8x128xf32>
    %cst_5 = arith.constant 0.000000e+00 : f32
    %6 = vector.broadcast %cst_5 : f32 to vector<8x128xf32>
    %7 = arith.maximumf %5, %6 : vector<8x128xf32>
    %c0_6 = arith.constant 0 : index
    %c0_7 = arith.constant 0 : index
    %8 = vector.load %arg4[%c0_6, %c0_7] : memref<128x128xf32, #tpu.memory_space<vmem>>, vector<128x128xf32>
    %cst_8 = arith.constant dense<0.000000e+00> : vector<8x128xf32>
    %9 = tpu.matmul %7, %8, %cst_8 {dimension_numbers = #tpu.dot_dimension_numbers<[1], [0], [0], [1], [0, 0, 1, 1], [], []>} : vector<8x128xf32>, vector<128x128xf32>, vector<8x128xf32> -> vector<8x128xf32>
    %c0_9 = arith.constant 0 : index
    %c0_10 = arith.constant 0 : index
    %10 = vector.load %arg5[%c0_9, %c0_10] : memref<1x128xf32, #tpu.memory_space<vmem>>, vector<1x128xf32>
    %11 = vector.broadcast %10 : vector<1x128xf32> to vector<8x128xf32>
    %12 = arith.addf %9, %11 : vector<8x128xf32>
    %c0_11 = arith.constant 0 : index
    %c0_12 = arith.constant 0 : index
    %13 = vector.load %arg6[%c0_11, %c0_12] : memref<8x128xf32, #tpu.memory_space<vmem>>, vector<8x128xf32>
    tpu.vector_store %arg6[%c0_11, %c0_12], %12 {strides = array<i32>} : memref<8x128xf32, #tpu.memory_space<vmem>>, vector<8x128xf32>,
    return
  }
  func.func @transform_0(%arg0: i32) -> (i32, i32) {
    %c0_i32 = arith.constant 0 : i32
    %c0_i32_0 = arith.constant 0 : i32
    return %arg0, %c0_i32 : i32, i32
  }
  func.func @transform_1(%arg0: i32) -> (i32, i32) {
    %c0_i32 = arith.constant 0 : i32
    %c0_i32_0 = arith.constant 0 : i32
    %c0_i32_1 = arith.constant 0 : i32
    return %c0_i32, %c0_i32_0 : i32, i32
  }
  func.func @transform_2(%arg0: i32) -> (i32, i32) {
    %c0_i32 = arith.constant 0 : i32
    %c0_i32_0 = arith.constant 0 : i32
    %c0_i32_1 = arith.constant 0 : i32
    return %c0_i32, %c0_i32_0 : i32, i32
  }
  func.func @transform_3(%arg0: i32) -> (i32, i32) {
    %c0_i32 = arith.constant 0 : i32
    %c0_i32_0 = arith.constant 0 : i32
    %c0_i32_1 = arith.constant 0 : i32
    return %c0_i32, %c0_i32_0 : i32, i32
  }
  func.func @transform_4(%arg0: i32) -> (i32, i32) {
    %c0_i32 = arith.constant 0 : i32
    %c0_i32_0 = arith.constant 0 : i32
    %c0_i32_1 = arith.constant 0 : i32
    return %c0_i32, %c0_i32_0 : i32, i32
  }
  func.func @transform_5(%arg0: i32) -> (i32, i32) {
    %c0_i32 = arith.constant 0 : i32
    %c0_i32_0 = arith.constant 0 : i32
    return %arg0, %c0_i32 : i32, i32
  }
}

</mosaic_0001>

<bundles_post_ra>
// kernel: _dqn_forward_impl.1
= control target key start
LH: loop header
LB: loop body
LE: loop exit
PB: predicated region body
PF: predicated region fallthrough
CT: control target
= control target key end

     0   :  { %10 = vsyncpa [#allocation3], 0  ;;  %s281_s0 = inlined_call_operand.hbm [shape: f32[8,16], index: 0, kind: input, shape index: {}]   ;;  %s282_s1 = inlined_call_operand.hbm [shape: f32[16,128], index: 1, kind: input, shape index: {}]   ;;  %s283_s2 = inlined_call_operand.vmem [shape: f32[1,128], index: 2, kind: input, shape index: {}]   ;;  %s284_s3 = inlined_call_operand.hbm [shape: f32[128,128], index: 3, kind: input, shape index: {}]   ;;  %s285_s4 = inlined_call_operand.vmem [shape: f32[1,128], index: 4, kind: input, shape index: {}]   ;;  %s286_s5 = inlined_call_operand.vmem [shape: f32[8,128], index: 5, kind: output, shape index: {}]  }
   0x1   :  { %11 = vsyncpa [#allocation5], 0  ;;  %s27_s20 = sshll.u32 %s282_s1, 4  ;;  %s228_s21 = smov [#allocation4]   ;;  %s28_s20 = int_to_ptr.hbm [resolvable:$true] %s27_s20 }
   0x2   :  { %s29_s22 = sshll.u32 %s228_s21, 4  ;;  %s17_s25 = sshll.u32 %s281_s0, 4  ;;  %s30_s22 = int_to_ptr.vmem [resolvable:$true] %s29_s22  ;;  %s18_s25 = int_to_ptr.hbm [resolvable:$true] %s17_s25 }
   0x3   :  { %s229_s26 = smov 128   ;;  %s230_s27 = smov 8  }
   0x4   :  { %35 = dma.hbm_to_vmem [thread:$0]  %s28_s20, 256, %s30_s22, [#allocation5], %s229_s26, %s229_s26, %s230_s27  }
   0x5   :  { %s231_s28 = smov [#allocation2]   ;;  %s42_s7 = sshll.u32 %s284_s3, 4  ;;  %s43_s7 = int_to_ptr.hbm [resolvable:$true] %s42_s7 }
   0x6   :  { %s19_s29 = sshll.u32 %s231_s28, 4  ;;  %s232_s1 = smov [#allocation6]   ;;  %s20_s29 = int_to_ptr.vmem [resolvable:$true] %s19_s29 }
   0x7   :  { %22 = dma.hbm_to_vmem [thread:$0]  %s18_s25, 128, %s20_s29, [#allocation3]  }
   0x8   :  { %s44_s8 = sshll.u32 %s232_s1, 4  ;;  %s45_s8 = int_to_ptr.vmem [resolvable:$true] %s44_s8 }
   0x9   :  { %50 = dma.hbm_to_vmem [thread:$0]  %s43_s7, 2048, %s45_s8, [#allocation5], %s229_s26, %s229_s26, %s230_s27  }
   0xa   :  { %224 = dma.done.wait [#allocation3], 128  }
   0xb   :  { %225 = vsyncadd [#allocation3], 4294967168 }
   0xc   :  { %226 = dma.done.wait [#allocation5], 2304  }
   0xd   :  { %227 = vsyncadd [#allocation5], 4294964992  ;;  %v67_v0 = vld [vmem:[#allocation4 + $0x8] sm:$0xff]  ;;  %v66_v1 = vld [vmem:[#allocation4] sm:$0xff]  ;;  %vm72_vm0 = vcmask 130048  }
   0xe   :  { %90 = vmatpush.msra.mxu0 %v67_v0  ;;  %v65_v2 = vld [vmem:[#allocation2] sm:$0xff]  ;;  %v112_v3 = vld [vmem:[#allocation6 + $0x78] sm:$0xff]  ;;  %v111_v4 = vld [vmem:[#allocation6 + $0x70] sm:$0xff] }
   0xf   :  { %117 = vmatpush.msra.mxu1 %v112_v3  ;;  %v110_v5 = vld [vmem:[#allocation6 + $0x68] sm:$0xff]  ;;  %v109_v6 = vld [vmem:[#allocation6 + $0x60] sm:$0xff]  ;;  %v108_v7 = vld [vmem:[#allocation6 + $0x58] sm:$0xff] }
  0x10   :  { %91 = vmatpush.msra.mxu0 %v66_v1  ;;  %v107_v8 = vld [vmem:[#allocation6 + $0x50] sm:$0xff]  ;;  %v106_v9 = vld [vmem:[#allocation6 + $0x48] sm:$0xff]  ;;  %v105_v10 = vld [vmem:[#allocation6 + $0x40] sm:$0xff] }
  0x11   :  { %144 = vmatmul.msk.f32.vlgmr.msra.gmra.mxu0 %vm72_vm0, %v65_v2  ;;  %118 = vmatpush.msra.mxu1 %v111_v4  ;;  %v104_v11 = vld [vmem:[#allocation6 + $0x38] sm:$0xff]  ;;  %v103_v12 = vld [vmem:[#allocation6 + $0x30] sm:$0xff]  ;;  %v102_v13 = vld [vmem:[#allocation6 + $0x28] sm:$0xff] }
  0x12   :  { %v101_v14 = vld [vmem:[#allocation6 + $0x20] sm:$0xff]  ;;  %v100_v15 = vld [vmem:[#allocation6 + $0x18] sm:$0xff]  ;;  %v99_v16 = vld [vmem:[#allocation6 + $0x10] sm:$0xff] }
  0x13   :  { %119 = vmatpush.msra.mxu1 %v110_v5  ;;  %v98_v17 = vld [vmem:[#allocation6 + $0x8] sm:$0xff]  ;;  %v97_v18 = vld [vmem:[#allocation6] sm:$0xff] }
  0x14   :  { %v150_v19 = vld [vmem:[%s283_s2] ss:$0 sm:$0xff] }
  0x15   :  { %120 = vmatpush.msra.mxu1 %v109_v6  ;;  %v151_v23 = vld [vmem:[%s285_s4] ss:$0 sm:$0xff] }
  0x17   :  { %121 = vmatpush.msra.mxu1 %v108_v7 }
  0x19   :  { %122 = vmatpush.msra.mxu1 %v107_v8 }
  0x1b   :  { %123 = vmatpush.msra.mxu1 %v106_v9 }
  0x1d   :  { %124 = vmatpush.msra.mxu1 %v105_v10 }
  0x1f   :  { %125 = vmatpush.msra.mxu1 %v104_v11 }
  0x21   :  { %126 = vmatpush.msra.mxu1 %v103_v12 }
  0x23   :  { %127 = vmatpush.msra.mxu1 %v102_v13 }
  0x25   :  { %128 = vmatpush.msra.mxu1 %v101_v14 }
  0x27   :  { %129 = vmatpush.msra.mxu1 %v100_v15 }
  0x29   :  { %130 = vmatpush.msra.mxu1 %v99_v16 }
  0x2b   :  { %131 = vmatpush.msra.mxu1 %v98_v17 }
  0x2d   :  { %132 = vmatpush.msra.mxu1 %v97_v18 }
  0x8e   :  { %v93_v20 = vpop.f32.mrf.mxu0 }
  0x8f   :  { %v94_v21 = vadd.f32 %v150_v19, %v93_v20 }
  0x91   :  { %v96_v22 = vmax.f32 %v94_v21, 0.0 }
  0x93   :  { %133 = vmatmul.f32.vlgmr.msra.gmra.mxu1 %v96_v22 }
 0x110   :  { %v134_v24 = vpop.f32.mrf.mxu1 }
 0x111   :  { %v135_v25 = vadd.f32 %v151_v23, %v134_v24 }
 0x113   :  { %137 = vst [vmem:[%s286_s5] sm:$0xff] %v135_v25 }
 0x114   :  { %142 = vsyncpa [#allocation3], 1 }
 0x115   :  { %143 = vsyncpa [#allocation5], 1 }

</bundles_post_ra>
